<compile_context>
chip_gen: v6e
topology: v6e:2x2x1
jax: 0.10.0
libtpu: 0.0.40
codegen_flags: <defaults>
</compile_context>

<pallas_src>
import functools

import jax
import jax.numpy as jnp
from jax.experimental import pallas as pl
from jax.experimental.pallas import tpu as pltpu


def _round_up(x, m):
    return ((x + m - 1) // m) * m


def _mlp_kernel(xo_ref, xd_ref, w1o_ref, w1d_ref, b1_ref,
                w2_ref, b2_ref, w3_ref, b3_ref, o_ref):
    # fc1 split across the two concatenated inputs + bias + ReLU (f32 MXU).
    h1 = (jnp.dot(xo_ref[...], w1o_ref[...], preferred_element_type=jnp.float32)
          + jnp.dot(xd_ref[...], w1d_ref[...], preferred_element_type=jnp.float32)
          + b1_ref[...])
    h1 = jnp.maximum(h1, 0.0)                                        # (TB, n1)

    # fc2 + bias + ReLU
    h2 = jnp.dot(h1, w2_ref[...], preferred_element_type=jnp.float32) + b2_ref[...]
    h2 = jnp.maximum(h2, 0.0)                                        # (TB, n2)

    # out layer (n2 -> 1): VPU multiply + lane reduction (avoid N=1 MXU matmul),
    # then sigmoid.
    z = jnp.sum(h2 * w3_ref[...], axis=-1, keepdims=True) + b3_ref[...]
    o_ref[...] = jax.nn.sigmoid(z).astype(o_ref.dtype)               # (TB, 1)


@functools.partial(jax.jit, static_argnames=("block_b",))
def marker_both_forward(xo, xd, params, block_b=4096):
    """xo: (B, D_o), xd: (B, D_d). Returns (B, 1) sigmoid output (f32)."""
    w1, b1, w2, b2, w3, b3 = params
    B, D_o = xo.shape
    _, D_d = xd.shape
    n1 = w1.shape[1]
    n2 = w2.shape[1]

    # Split fc1 weight so no concatenated activation ever touches HBM.
    w1_o = w1[:D_o].astype(jnp.float32)                              # (D_o, n1)
    w1_d = w1[D_o:].astype(jnp.float32)                              # (D_d, n1)
    w2_f = w2.astype(jnp.float32)                                    # (n1, n2)
    b1_f = b1.reshape(1, n1).astype(jnp.float32)                     # (1, n1)
    b2_f = b2.reshape(1, n2).astype(jnp.float32)                     # (1, n2)
    w3_r = w3.reshape(1, n2).astype(jnp.float32)                     # (1, n2)
    b3_f = b3.reshape(1, 1).astype(jnp.float32)                      # (1, 1)

    # Batch tile: multiple of 8 sublanes; large (<= block_b) to amortize the
    # per-grid-step overhead.  No activation padding — the grid uses cdiv and
    # the partial last block is handled by Pallas' masked reads/writes.
    tb_full = _round_up(B, 8)
    if tb_full > block_b:
        TB = block_b
    elif B > 8:
        # Fits in a single tile: split into two so the "parallel" batch axis
        # can shard across both TensorCores (v7x megacore).
        TB = min(_round_up(pl.cdiv(B, 2), 8), tb_full)
    else:
        TB = tb_full
    grid = (pl.cdiv(B, TB),)

    act_bytes = xo.dtype.itemsize
    weight_bytes = sum(int(a.size) * a.dtype.itemsize
                       for a in (w1_o, w1_d, b1_f, w2_f, b2_f, w3_r, b3_f))
    cost = pl.CostEstimate(
        flops=2 * B * (D_o * n1 + D_d * n1 + n1 * n2 + n2),
        transcendentals=B,                                            # sigmoid exp
        bytes_accessed=B * (D_o + D_d) * act_bytes + B * 4 + weight_bytes,
    )

    tile = lambda bs: pl.BlockSpec(bs, lambda i: (i, 0))              # batch-tiled
    const = lambda bs: pl.BlockSpec(bs, lambda i: (0, 0))             # VMEM-resident

    out = pl.pallas_call(
        _mlp_kernel,
        out_shape=jax.ShapeDtypeStruct((B, 1), jnp.float32),
        grid=grid,
        in_specs=[
            tile((TB, D_o)),          # xo
            tile((TB, D_d)),          # xd
            const((D_o, n1)),         # w1_o
            const((D_d, n1)),         # w1_d
            const((1, n1)),           # b1
            const((n1, n2)),          # w2
            const((1, n2)),           # b2
            const((1, n2)),           # w3 (row)
            const((1, 1)),            # b3
        ],
        out_specs=tile((TB, 1)),
        compiler_params=pltpu.CompilerParams(
            dimension_semantics=("parallel",)),
        cost_estimate=cost,
    )(xo, xd, w1_o, w1_d, b1_f, w2_f, b2_f, w3_r, b3_f)

    return out


def init_params(key, inp_dim=192, n_nodes1=64, n_nodes2=32):
    """Deterministic init, shapes matching BinaryRegressor.__init__ (weights transposed)."""
    ks = jax.random.split(key, 6)

    def lin(kw, kb, fan_in, fan_out):
        bound = 1.0 / jnp.sqrt(fan_in)
        w = jax.random.uniform(kw, (fan_in, fan_out), jnp.float32, -bound, bound)
        b = jax.random.uniform(kb, (1, fan_out), jnp.float32, -bound, bound)
        return w, b

    w1, b1 = lin(ks[0], ks[1], inp_dim, n_nodes1)
    w2, b2 = lin(ks[2], ks[3], n_nodes1, n_nodes2)
    w3, b3 = lin(ks[4], ks[5], n_nodes2, 1)
    return (w1, b1, w2, b2, w3, b3)


def _reference(xo, xd, params):
    xc = jnp.concatenate([xo, xd], axis=1)
    w1, b1, w2, b2, w3, b3 = params
    h1 = jnp.maximum(xc @ w1 + b1, 0.0)
    h2 = jnp.maximum(h1 @ w2 + b2, 0.0)
    return jax.nn.sigmoid(h2 @ w3 + b3)


if __name__ == "__main__":
    key = jax.random.PRNGKey(0)
    k_xo, k_xd, k_p = jax.random.split(key, 3)

    D_o, D_d = 96, 96          # cat along dim 1 -> inp_dim = 192
    params = init_params(k_p, inp_dim=D_o + D_d, n_nodes1=64, n_nodes2=32)

    ok = True
    # B=8: single-tile path.  B=20: two-tile path with a partial last block
    # (exercises the no-padding / masked-last-block behavior).
    for B in (8, 20):
        kxo, kxd = jax.random.split(jax.random.fold_in(k_xo, B))
        xo = jax.random.normal(kxo, (B, D_o), jnp.float32)
        xd = jax.random.normal(kxd, (B, D_d), jnp.float32)

        out = marker_both_forward(xo, xd, params)
        out = jax.block_until_ready(out)

        ref = _reference(xo, xd, params)
        assert out.shape == (B, 1)
        close = jnp.allclose(out, ref, atol=2e-2, rtol=2e-2)
        if not close:
            ok = False
            print(f"B={B}: max err {jnp.max(jnp.abs(out - ref))}")

    if ok:
        print("KERNEL_OK")
</pallas_src>

<mosaic_0001>
module attributes {stable_mosaic.version = 11 : i64} {
  func.func @_mlp_kernel(%arg0: i32, %arg1: memref<8x96xf32, #tpu.memory_space<vmem>>, %arg2: memref<8x96xf32, #tpu.memory_space<vmem>>, %arg3: memref<96x64xf32, #tpu.memory_space<vmem>>, %arg4: memref<96x64xf32, #tpu.memory_space<vmem>>, %arg5: memref<1x64xf32, #tpu.memory_space<vmem>>, %arg6: memref<64x32xf32, #tpu.memory_space<vmem>>, %arg7: memref<1x32xf32, #tpu.memory_space<vmem>>, %arg8: memref<1x32xf32, #tpu.memory_space<vmem>>, %arg9: memref<1x1xf32, #tpu.memory_space<vmem>>, %arg10: memref<8x1xf32, #tpu.memory_space<vmem>>) attributes {dimension_semantics = [#tpu.dimension_semantics<parallel>], iteration_bounds = array<i64: 1>, scalar_prefetch = 0 : i64, scratch_operands = 0 : i64, tpu.core_type = #tpu.core_type<tc>, window_params = [{transform_indices = @transform_0, window_bounds = array<i64: 8, 96>}, {transform_indices = @transform_1, window_bounds = array<i64: 8, 96>}, {pipeline_mode = #tpu.pipeline_mode<synchronous>, transform_indices = @transform_2, window_bounds = array<i64: 96, 64>}, {pipeline_mode = #tpu.pipeline_mode<synchronous>, transform_indices = @transform_3, window_bounds = array<i64: 96, 64>}, {pipeline_mode = #tpu.pipeline_mode<synchronous>, transform_indices = @transform_4, window_bounds = array<i64: 1, 64>}, {pipeline_mode = #tpu.pipeline_mode<synchronous>, transform_indices = @transform_5, window_bounds = array<i64: 64, 32>}, {pipeline_mode = #tpu.pipeline_mode<synchronous>, transform_indices = @transform_6, window_bounds = array<i64: 1, 32>}, {pipeline_mode = #tpu.pipeline_mode<synchronous>, transform_indices = @transform_7, window_bounds = array<i64: 1, 32>}, {pipeline_mode = #tpu.pipeline_mode<synchronous>, transform_indices = @transform_8, window_bounds = array<i64: 1, 1>}, {transform_indices = @transform_9, window_bounds = array<i64: 8, 1>}]} {
    %c0 = arith.constant 0 : index
    %c0_0 = arith.constant 0 : index
    %0 = vector.load %arg1[%c0, %c0_0] : memref<8x96xf32, #tpu.memory_space<vmem>>, vector<8x96xf32>
    %c0_1 = arith.constant 0 : index
    %c0_2 = arith.constant 0 : index
    %1 = vector.load %arg3[%c0_1, %c0_2] : memref<96x64xf32, #tpu.memory_space<vmem>>, vector<96x64xf32>
    %cst = arith.constant dense<0.000000e+00> : vector<8x64xf32>
    %2 = tpu.matmul %0, %1, %cst {dimension_numbers = #tpu.dot_dimension_numbers<[1], [0], [0], [1], [0, 0, 1, 1], [], []>} : vector<8x96xf32>, vector<96x64xf32>, vector<8x64xf32> -> vector<8x64xf32>
    %c0_3 = arith.constant 0 : index
    %c0_4 = arith.constant 0 : index
    %3 = vector.load %arg2[%c0_3, %c0_4] : memref<8x96xf32, #tpu.memory_space<vmem>>, vector<8x96xf32>
    %c0_5 = arith.constant 0 : index
    %c0_6 = arith.constant 0 : index
    %4 = vector.load %arg4[%c0_5, %c0_6] : memref<96x64xf32, #tpu.memory_space<vmem>>, vector<96x64xf32>
    %cst_7 = arith.constant dense<0.000000e+00> : vector<8x64xf32>
    %5 = tpu.matmul %3, %4, %cst_7 {dimension_numbers = #tpu.dot_dimension_numbers<[1], [0], [0], [1], [0, 0, 1, 1], [], []>} : vector<8x96xf32>, vector<96x64xf32>, vector<8x64xf32> -> vector<8x64xf32>
    %6 = arith.addf %2, %5 : vector<8x64xf32>
    %c0_8 = arith.constant 0 : index
    %c0_9 = arith.constant 0 : index
    %7 = vector.load %arg5[%c0_8, %c0_9] : memref<1x64xf32, #tpu.memory_space<vmem>>, vector<1x64xf32>
    %8 = vector.broadcast %7 : vector<1x64xf32> to vector<8x64xf32>
    %9 = arith.addf %6, %8 : vector<8x64xf32>
    %cst_10 = arith.constant 0.000000e+00 : f32
    %10 = vector.broadcast %cst_10 : f32 to vector<8x64xf32>
    %11 = arith.maximumf %9, %10 : vector<8x64xf32>
    %c0_11 = arith.constant 0 : index
    %c0_12 = arith.constant 0 : index
    %12 = vector.load %arg6[%c0_11, %c0_12] : memref<64x32xf32, #tpu.memory_space<vmem>>, vector<64x32xf32>
    %cst_13 = arith.constant dense<0.000000e+00> : vector<8x32xf32>
    %13 = tpu.matmul %11, %12, %cst_13 {dimension_numbers = #tpu.dot_dimension_numbers<[1], [0], [0], [1], [0, 0, 1, 1], [], []>} : vector<8x64xf32>, vector<64x32xf32>, vector<8x32xf32> -> vector<8x32xf32>
    %c0_14 = arith.constant 0 : index
    %c0_15 = arith.constant 0 : index
    %14 = vector.load %arg7[%c0_14, %c0_15] : memref<1x32xf32, #tpu.memory_space<vmem>>, vector<1x32xf32>
    %15 = vector.broadcast %14 : vector<1x32xf32> to vector<8x32xf32>
    %16 = arith.addf %13, %15 : vector<8x32xf32>
    %cst_16 = arith.constant 0.000000e+00 : f32
    %17 = vector.broadcast %cst_16 : f32 to vector<8x32xf32>
    %18 = arith.maximumf %16, %17 : vector<8x32xf32>
    %c0_17 = arith.constant 0 : index
    %c0_18 = arith.constant 0 : index
    %19 = vector.load %arg8[%c0_17, %c0_18] : memref<1x32xf32, #tpu.memory_space<vmem>>, vector<1x32xf32>
    %20 = vector.broadcast %19 : vector<1x32xf32> to vector<8x32xf32>
    %21 = arith.mulf %18, %20 : vector<8x32xf32>
    %cst_19 = arith.constant dense<0.000000e+00> : vector<8xf32>
    %22 = vector.multi_reduction <add>, %21, %cst_19 [1] : vector<8x32xf32> to vector<8xf32>
    %23 = vector.shape_cast %22 : vector<8xf32> to vector<8x1xf32>
    %c0_20 = arith.constant 0 : index
    %c0_21 = arith.constant 0 : index
    %24 = vector.load %arg9[%c0_20, %c0_21] : memref<1x1xf32, #tpu.memory_space<vmem>>, vector<1x1xf32>
    %25 = vector.broadcast %24 : vector<1x1xf32> to vector<8x1xf32>
    %26 = arith.addf %23, %25 : vector<8x1xf32>
    %27 = arith.negf %26 : vector<8x1xf32>
    %28 = math.exp %27 : vector<8x1xf32>
    %cst_22 = arith.constant 1.000000e+00 : f32
    %29 = vector.broadcast %cst_22 : f32 to vector<8x1xf32>
    %30 = arith.addf %29, %28 : vector<8x1xf32>
    %31 = arith.divf %29, %30 : vector<8x1xf32>
    %c0_23 = arith.constant 0 : index
    %c0_24 = arith.constant 0 : index
    %32 = vector.load %arg10[%c0_23, %c0_24] : memref<8x1xf32, #tpu.memory_space<vmem>>, vector<8x1xf32>
    tpu.vector_store %arg10[%c0_23, %c0_24], %31 {strides = array<i32>} : memref<8x1xf32, #tpu.memory_space<vmem>>, vector<8x1xf32>,
    return
  }
  func.func @transform_0(%arg0: i32) -> (i32, i32) {
    %c0_i32 = arith.constant 0 : i32
    %c0_i32_0 = arith.constant 0 : i32
    return %arg0, %c0_i32 : i32, i32
  }
  func.func @transform_1(%arg0: i32) -> (i32, i32) {
    %c0_i32 = arith.constant 0 : i32
    %c0_i32_0 = arith.constant 0 : i32
    return %arg0, %c0_i32 : i32, i32
  }
  func.func @transform_2(%arg0: i32) -> (i32, i32) {
    %c0_i32 = arith.constant 0 : i32
    %c0_i32_0 = arith.constant 0 : i32
    %c0_i32_1 = arith.constant 0 : i32
    return %c0_i32, %c0_i32_0 : i32, i32
  }
  func.func @transform_3(%arg0: i32) -> (i32, i32) {
    %c0_i32 = arith.constant 0 : i32
    %c0_i32_0 = arith.constant 0 : i32
    %c0_i32_1 = arith.constant 0 : i32
    return %c0_i32, %c0_i32_0 : i32, i32
  }
  func.func @transform_4(%arg0: i32) -> (i32, i32) {
    %c0_i32 = arith.constant 0 : i32
    %c0_i32_0 = arith.constant 0 : i32
    %c0_i32_1 = arith.constant 0 : i32
    return %c0_i32, %c0_i32_0 : i32, i32
  }
  func.func @transform_5(%arg0: i32) -> (i32, i32) {
    %c0_i32 = arith.constant 0 : i32
    %c0_i32_0 = arith.constant 0 : i32
    %c0_i32_1 = arith.constant 0 : i32
    return %c0_i32, %c0_i32_0 : i32, i32
  }
  func.func @transform_6(%arg0: i32) -> (i32, i32) {
    %c0_i32 = arith.constant 0 : i32
    %c0_i32_0 = arith.constant 0 : i32
    %c0_i32_1 = arith.constant 0 : i32
    return %c0_i32, %c0_i32_0 : i32, i32
  }
  func.func @transform_7(%arg0: i32) -> (i32, i32) {
    %c0_i32 = arith.constant 0 : i32
    %c0_i32_0 = arith.constant 0 : i32
    %c0_i32_1 = arith.constant 0 : i32
    return %c0_i32, %c0_i32_0 : i32, i32
  }
  func.func @transform_8(%arg0: i32) -> (i32, i32) {
    %c0_i32 = arith.constant 0 : i32
    %c0_i32_0 = arith.constant 0 : i32
    %c0_i32_1 = arith.constant 0 : i32
    return %c0_i32, %c0_i32_0 : i32, i32
  }
  func.func @transform_9(%arg0: i32) -> (i32, i32) {
    %c0_i32 = arith.constant 0 : i32
    %c0_i32_0 = arith.constant 0 : i32
    return %arg0, %c0_i32 : i32, i32
  }
}

</mosaic_0001>

<bundles_post_ra>
// kernel: marker_both_forward.1
= control target key start
LH: loop header
LB: loop body
LE: loop exit
PB: predicated region body
PF: predicated region fallthrough
CT: control target
= control target key end

     0   :  { %v460_v0 = vmov 0.0   ;;  %vm60_vm0 = vcmask 785408   ;;  %vm461_vm1 = vmmov 0   ;;  %vm231_vm2 = vcmask 523264   ;;  %s664_s3 = inlined_call_operand.vmem [shape: f32[96,64], index: 3, kind: input, shape index: {}]   ;;  %s665_s2 = inlined_call_operand.vmem [shape: f32[96,64], index: 2, kind: input, shape index: {}]   ;;  %s666_s1 = inlined_call_operand.vmem [shape: f32[8,96], index: 1, kind: input, shape index: {}]   ;;  %s667_s0 = inlined_call_operand.vmem [shape: f32[8,96], index: 0, kind: input, shape index: {}]   ;;  %s668_s5 = inlined_call_operand.vmem [shape: f32[64,32], index: 5, kind: input, shape index: {}]   ;;  %s669_s4 = inlined_call_operand.vmem [shape: f32[1,64], index: 4, kind: input, shape index: {}]   ;;  %s670_s8 = inlined_call_operand.<no memory space> [shape: f32[1,1], index: 8, kind: input, shape index: {}]   ;;  %s671_s6 = inlined_call_operand.vmem [shape: f32[1,32], index: 6, kind: input, shape index: {}]   ;;  %s672_s7 = inlined_call_operand.vmem [shape: f32[1,32], index: 7, kind: input, shape index: {}]   ;;  %s673_s9 = inlined_call_operand.vmem [shape: f32[8,1], index: 9, kind: output, shape index: {}]  }
   0x1   :  { %381 = vmatprep.subr.mxu0 %v460_v0  ;;  %408 = vmatprep.subr.mxu1 %v460_v0  ;;  %v59_v1 = vld [vmem:[%s664_s3 + $0x58] sm:$0xff]  ;;  %v58_v3 = vld [vmem:[%s664_s3 + $0x50] sm:$0xff]  ;;  %v57_v5 = vld [vmem:[%s664_s3 + $0x48] sm:$0xff]  ;;  %v14_v43 = vstv %s670_s8  ;;  %vm314_vm3 = vcmask 261120   ;;  %vm332_vm4 = vcmask 7168  }
   0x2   :  { %v46_v2 = vld [vmem:[%s665_s2 + $0x58] sm:$0xff]  ;;  %382 = vmatpush3.msra.mxu0 %v59_v1  ;;  %v45_v4 = vld [vmem:[%s665_s2 + $0x50] sm:$0xff]  ;;  %v44_v6 = vld [vmem:[%s665_s2 + $0x48] sm:$0xff]  ;;  %405 = vmatprep.mubr.msk.f32.mxu0 %vm461_vm1, %v460_v0  ;;  %15 = vst [vmem:[#allocation2] sm:$0x1] %v14_v43 }
   0x3   :  { %409 = vmatpush3.msra.mxu1 %v46_v2  ;;  %383 = vmatprep.subr.mxu0 %v460_v0  ;;  %v56_v7 = vld [vmem:[%s664_s3 + $0x40] sm:$0xff]  ;;  %v55_v9 = vld [vmem:[%s664_s3 + $0x38] sm:$0xff]  ;;  %v54_v11 = vld [vmem:[%s664_s3 + $0x30] sm:$0xff] }
   0x4   :  { %410 = vmatprep.subr.mxu1 %v460_v0  ;;  %384 = vmatpush3.msra.mxu0 %v58_v3  ;;  %v43_v8 = vld [vmem:[%s665_s2 + $0x40] sm:$0xff]  ;;  %v42_v10 = vld [vmem:[%s665_s2 + $0x38] sm:$0xff]  ;;  %v41_v12 = vld [vmem:[%s665_s2 + $0x30] sm:$0xff] }
   0x5   :  { %411 = vmatpush3.msra.mxu1 %v45_v4  ;;  %385 = vmatprep.subr.mxu0 %v460_v0  ;;  %v53_v13 = vld [vmem:[%s664_s3 + $0x28] sm:$0xff]  ;;  %v52_v15 = vld [vmem:[%s664_s3 + $0x20] sm:$0xff]  ;;  %v51_v17 = vld [vmem:[%s664_s3 + $0x18] sm:$0xff] }
   0x6   :  { %412 = vmatprep.subr.mxu1 %v460_v0  ;;  %386 = vmatpush3.msra.mxu0 %v57_v5  ;;  %v40_v14 = vld [vmem:[%s665_s2 + $0x28] sm:$0xff]  ;;  %v39_v16 = vld [vmem:[%s665_s2 + $0x20] sm:$0xff]  ;;  %v38_v18 = vld [vmem:[%s665_s2 + $0x18] sm:$0xff] }
   0x7   :  { %413 = vmatpush3.msra.mxu1 %v44_v6  ;;  %387 = vmatprep.subr.mxu0 %v460_v0  ;;  %v50_v19 = vld [vmem:[%s664_s3 + $0x10] sm:$0xff]  ;;  %v49_v21 = vld [vmem:[%s664_s3 + $0x8] sm:$0xff]  ;;  %v48_v23 = vld [vmem:[%s664_s3] sm:$0xff] }
   0x8   :  { %414 = vmatprep.subr.mxu1 %v460_v0  ;;  %388 = vmatpush3.msra.mxu0 %v56_v7  ;;  %v37_v20 = vld [vmem:[%s665_s2 + $0x10] sm:$0xff]  ;;  %v36_v22 = vld [vmem:[%s665_s2 + $0x8] sm:$0xff]  ;;  %v35_v24 = vld [vmem:[%s665_s2] sm:$0xff] }
   0x9   :  { %415 = vmatpush3.msra.mxu1 %v43_v8  ;;  %389 = vmatprep.subr.mxu0 %v460_v0  ;;  %v47_v25 = vld [vmem:[%s666_s1] sm:$0xff]  ;;  %v223_v27 = vld [vmem:[%s668_s5 + $0x38] sm:$0xff]  ;;  %v222_v28 = vld [vmem:[%s668_s5 + $0x30] sm:$0xff] }
   0xa   :  { %416 = vmatprep.subr.mxu1 %v460_v0  ;;  %390 = vmatpush3.msra.mxu0 %v55_v9  ;;  %v34_v26 = vld [vmem:[%s667_s0] sm:$0xff]  ;;  %v221_v29 = vld [vmem:[%s668_s5 + $0x28] sm:$0xff]  ;;  %v219_v31 = vld [vmem:[%s668_s5 + $0x18] sm:$0xff] }
   0xb   :  { %417 = vmatpush3.msra.mxu1 %v42_v10  ;;  %391 = vmatprep.subr.mxu0 %v460_v0  ;;  %v220_v30 = vld [vmem:[%s668_s5 + $0x20] sm:$0xff]  ;;  %v218_v32 = vld [vmem:[%s668_s5 + $0x10] sm:$0xff]  ;;  %v217_v33 = vld [vmem:[%s668_s5 + $0x8] sm:$0xff] }
   0xc   :  { %418 = vmatprep.subr.mxu1 %v460_v0  ;;  %392 = vmatpush3.msra.mxu0 %v54_v11  ;;  %v216_v34 = vld [vmem:[%s668_s5] sm:$0xff] }
   0xd   :  { %419 = vmatpush3.msra.mxu1 %v41_v12  ;;  %393 = vmatprep.subr.mxu0 %v460_v0  ;;  %v340_v37 = vld [vmem:[%s669_s4] ss:$0 sm:$0xff] }
   0xe   :  { %420 = vmatprep.subr.mxu1 %v460_v0  ;;  %394 = vmatpush3.msra.mxu0 %v53_v13  ;;  %v341_v44 = vld [vmem:[%s671_s6] ss:$0 sm:$0xff] }
   0xf   :  { %421 = vmatpush3.msra.mxu1 %v40_v14  ;;  %395 = vmatprep.subr.mxu0 %v460_v0  ;;  %v343_v48 = vld [vmem:[%s672_s7] ss:$0 sm:$0xff] }
  0x10   :  { %422 = vmatprep.subr.mxu1 %v460_v0  ;;  %396 = vmatpush3.msra.mxu0 %v52_v15  ;;  %v344_v52 = vld [vmem:[#allocation2] ss:$0 sm:$0xff] }
  0x11   :  { %423 = vmatpush3.msra.mxu1 %v39_v16  ;;  %397 = vmatprep.subr.mxu0 %v460_v0 }
  0x12   :  { %424 = vmatprep.subr.mxu1 %v460_v0  ;;  %398 = vmatpush3.msra.mxu0 %v51_v17 }
  0x13   :  { %425 = vmatpush3.msra.mxu1 %v38_v18  ;;  %399 = vmatprep.subr.mxu0 %v460_v0 }
  0x14   :  { %426 = vmatprep.subr.mxu1 %v460_v0  ;;  %400 = vmatpush3.msra.mxu0 %v50_v19 }
  0x15   :  { %427 = vmatpush3.msra.mxu1 %v37_v20  ;;  %401 = vmatprep.subr.mxu0 %v460_v0 }
  0x16   :  { %428 = vmatprep.subr.mxu1 %v460_v0  ;;  %402 = vmatpush3.msra.mxu0 %v49_v21 }
  0x17   :  { %429 = vmatpush3.msra.mxu1 %v36_v22  ;;  %403 = vmatprep.subr.mxu0 %v460_v0 }
  0x18   :  { %430 = vmatprep.subr.mxu1 %v460_v0  ;;  %404 = vmatpush3.msra.mxu0 %v48_v23 }
  0x19   :  { %431 = vmatpush3.msra.mxu1 %v35_v24  ;;  %432 = vmatprep.mubr.msk.f32.mxu1 %vm461_vm1, %v460_v0 }
  0x1a   :  { %406 = vmatmul.mubr.msk.f32.vlgmr.msra.gmra.mxu0 %vm60_vm0, %v47_v25  ;;  %433 = vmatmul.mubr.msk.f32.vlgmr.msra.gmra.mxu1 %vm60_vm0, %v34_v26 }
  0x1b   :  { %435 = vmatprep.subr.mxu0 %v460_v0  ;;  %451 = vmatprep.mubr.msk.f32.mxu0 %vm461_vm1, %v460_v0 }
  0x1c   :  { %436 = vmatpush3.msra.mxu0 %v223_v27 }
  0x1d   :  { %437 = vmatprep.subr.mxu0 %v460_v0 }
  0x1e   :  { %438 = vmatpush3.msra.mxu0 %v222_v28 }
  0x1f   :  { %439 = vmatprep.subr.mxu0 %v460_v0 }
  0x20   :  { %440 = vmatpush3.msra.mxu0 %v221_v29 }
  0x21   :  { %441 = vmatprep.subr.mxu0 %v460_v0 }
  0x22   :  { %442 = vmatpush3.msra.mxu0 %v220_v30 }
  0x23   :  { %443 = vmatprep.subr.mxu0 %v460_v0 }
  0x24   :  { %444 = vmatpush3.msra.mxu0 %v219_v31 }
  0x25   :  { %445 = vmatprep.subr.mxu0 %v460_v0 }
  0x26   :  { %446 = vmatpush3.msra.mxu0 %v218_v32 }
  0x27   :  { %447 = vmatprep.subr.mxu0 %v460_v0 }
  0x28   :  { %448 = vmatpush3.msra.mxu0 %v217_v33 }
  0x29   :  { %449 = vmatprep.subr.mxu0 %v460_v0 }
  0x2a   :  { %450 = vmatpush3.msra.mxu0 %v216_v34 }
  0xda   :  { %v130_v35 = vpop.f32.mrf.mxu0  ;;  %v203_v36 = vpop.f32.mrf.mxu1 }
  0xdb   :  { %v204_v38 = vadd.f32 %v203_v36, %v130_v35 }
  0xdc   :  { %v407_v39 = vpop.f32.mrf.mxu0  ;;  %v434_v40 = vpop.f32.mrf.mxu1 }
  0xdd   :  { %v214_v41 = vadd.f32 %v340_v37, %v204_v38 }
  0xdf   :  { %v215_v42 = vmax.f32 %v214_v41, 0.0 }
  0xe1   :  { %452 = vmatmul.mubr.msk.f32.vlgmr.msra.gmra.mxu0 %vm231_vm2, %v215_v42 }
 0x1a1   :  { %v301_v45 = vpop.f32.mrf.mxu0 }
 0x1a2   :  { %v302_v46 = vadd.f32 %v341_v44, %v301_v45 }
 0x1a3   :  { %v453_v47 = vpop.f32.mrf.mxu0 }
 0x1a4   :  { %v305_v49 = vmax.f32 %v302_v46, 0.0 }
 0x1a6   :  { %v313_v50 = vmul.f32 %v343_v48, %v305_v49 }
 0x1a8   :  { %v315_v51 = vsel %vm314_vm3, %v313_v50, 0.0 }
 0x1a9   :  { %316 = vadd.xlane.f32.xlu0 %v315_v51 }
 0x232   :  { %v317_v53 = vpop.xlane.xlu0 %316 }
 0x233   :  { %v325_v54 = vadd.f32 %v344_v52, %v317_v53 }
 0x235   :  { %v345_v55 = vmul.f32 -1.442695, %v325_v54 }
 0x237   :  { %456 = vpow2.f32 %v345_v55 }
 0x244   :  { %v457_v56 = vpop.eup %456 }
 0x245   :  { %v329_v57 = vadd.f32 1.0, %v457_v56 }
 0x247   :  { %458 = vrcp.f32 %v329_v57 }
 0x254   :  { %v459_v58 = vpop.eup %458 }
 0x255   :  { %333 = vst.msk [vmem:[%s673_s9] sm:$0xff] %vm332_vm4, %v459_v58 }

</bundles_post_ra>
